<compile_context>
chip_gen: v7x
topology: tpu7x:2x2x1
jax: 0.10.0
libtpu: 0.0.40
codegen_flags: <defaults>
</compile_context>

<pallas_src>
import jax
import jax.numpy as jnp
from jax.experimental import pallas as pl
from jax.experimental.pallas import tpu as pltpu


# ----------------------------------------------------------------------------- #
# Kernel
# ----------------------------------------------------------------------------- #
def _down_proj_act_kernel(x_ref, w_ref, scale_ref, bias_ref, o_ref, acc_ref):
    """Fused (x @ W) * scale + bias over a (tm, tn) output tile.

    Grid = (m_pad//tm, n_pad//tn, k_pad//tk); K is the innermost 'arbitrary'
    reduction axis. acc_ref is a persistent f32 VMEM accumulator for the current
    (i, j) output tile.
    """
    k = pl.program_id(2)

    @pl.when(k == 0)
    def _():
        acc_ref[...] = jnp.zeros_like(acc_ref)

    acc_ref[...] += jnp.dot(
        x_ref[...], w_ref[...], preferred_element_type=jnp.float32
    )

    @pl.when(k == pl.num_programs(2) - 1)
    def _():
        # Match torch bf16 semantics: Linear output in bf16, then bf16 mul, bf16 add.
        h = acc_ref[...].astype(o_ref.dtype)
        o_ref[...] = h * scale_ref[...] + bias_ref[...]


# ----------------------------------------------------------------------------- #
# Helpers
# ----------------------------------------------------------------------------- #
def _round_up(x, q):
    return ((x + q - 1) // q) * q


def _largest_divisor_tile(padded_dim, target, quantum=128):
    """Largest multiple of `quantum` <= min(target, padded_dim) dividing padded_dim."""
    t = min(target, padded_dim)
    t = max((t // quantum) * quantum, quantum)
    while padded_dim % t != 0:
        t -= quantum
    return t


def _pick_tm(M, max_tm):
    """Row tile that avoids gross padding for ragged prefill M."""
    m16 = _round_up(M, 16)          # bf16 sublane pack
    if m16 <= max_tm:
        return m16                  # single row-block, zero waste beyond 16-row pad
    cands = [t for t in (256, 512, 1024, 2048) if t <= max_tm]
    # Largest tile among those minimizing padded M (avoids up-to-511 junk rows).
    return min(cands, key=lambda t: (_round_up(M, t), -t))


def _vmem_capacity_bytes():
    try:
        return int(pltpu.get_tpu_info().vmem_capacity_bytes)
    except Exception:
        return 64 * 1024 * 1024     # conservative fallback (v7x per-TC VMEM)


def _vmem_estimate(tm, tn, tk):
    """Double-buffered x/w/out + f32 acc + scale/bias, in bytes (bf16 operands)."""
    return (2 * tm * tk * 2       # x double buffer
            + 2 * tk * tn * 2     # weight double buffer
            + 2 * tm * tn * 2     # output double buffer
            + tm * tn * 4         # f32 accumulator
            + 2 * 2 * tn * 2)     # scale / bias double buffers


# ----------------------------------------------------------------------------- #
# Load-time parameter preparation (do ONCE per layer, not per call)
# ----------------------------------------------------------------------------- #
def prepare_down_proj_params(w, scale, bias):
    """One-time prep of ActivationLayer('all', 'ffn') params.

    w:     (N, K) bf16  -- torch down_proj weight layout (hidden, intermediate)
    scale: (1, N) bf16  -- activation_scaling
    bias:  (1, N) bf16  -- activation_bias

    Transposes the weight to (K, N) and zero-pads K to a multiple of 1024
    (128 for small K) and N to a multiple of 512 (128 for small N) so large
    tk/tn tiles are always legal. Zero-padded K rows / N cols contribute
    exact zeros, and padded N cols are sliced off after the kernel.
    """
    N, K = w.shape
    k_quant = 1024 if K >= 1024 else 128
    n_quant = 512 if N >= 512 else 128
    k_pad = _round_up(K, k_quant)
    n_pad = _round_up(N, n_quant)

    w_t = jnp.pad(jnp.transpose(w), ((0, k_pad - K), (0, n_pad - N)))
    scale_p = jnp.pad(scale, ((0, 0), (0, n_pad - N)))
    bias_p = jnp.pad(bias, ((0, 0), (0, n_pad - N)))
    return {
        "w_t": w_t, "scale": scale_p, "bias": bias_p,
        "K": K, "N": N, "k_pad": k_pad, "n_pad": n_pad,
    }


# ----------------------------------------------------------------------------- #
# Per-call wrapper
# ----------------------------------------------------------------------------- #
def down_proj_activation(x, params, *, tm=None, tn=None, tk=None):
    """x: (B, S, K) bf16; params: output of prepare_down_proj_params.

    Returns (B, S, N) bf16 = (x @ W^T) * activation_scaling + activation_bias.
    """
    B, S, K = x.shape
    assert K == params["K"], (K, params["K"])
    N, k_pad, n_pad = params["N"], params["k_pad"], params["n_pad"]
    w_t, scale, bias = params["w_t"], params["scale"], params["bias"]

    M = B * S
    x2 = x.reshape(M, K)

    vmem_cap = _vmem_capacity_bytes()
    big_vmem = vmem_cap >= 100 * 1024 * 1024          # v5e/v6e (128 MiB) vs v7x (64 MiB)
    decode_like = M <= 32

    # --- tile selection -------------------------------------------------------
    if decode_like:
        # Weight-streaming bound: big weight blocks, few grid steps. Keep the j
        # axis at >=2 blocks when possible so v7x megacore splits the stream.
        if tm is None:
            tm = _round_up(M, 16)
        if tn is None:
            half = n_pad // 2
            tn = half if (half >= 256 and half % 128 == 0) else n_pad
        if tk is None:
            tk = _largest_divisor_tile(k_pad, 1024)
    else:
        # Prefill: compute-bound tiles, sized per-generation.
        tm_target = 2048 if big_vmem else 1024
        if tm is None:
            tm = _pick_tm(M, tm_target)
        if tn is None:
            tn = _largest_divisor_tile(n_pad, 1024)
        if tk is None:
            tk = _largest_divisor_tile(k_pad, 1024)

    # Keep the double-buffered working set comfortably inside this chip's VMEM.
    budget = int(0.70 * vmem_cap)
    while _vmem_estimate(tm, tn, tk) > budget and tm > 256:
        tm = max(256, tm // 2)
    while _vmem_estimate(tm, tn, tk) > budget and tn > 256:
        tn = _largest_divisor_tile(n_pad, max(256, tn // 2))
    while _vmem_estimate(tm, tn, tk) > budget and tk > 256:
        tk = _largest_divisor_tile(k_pad, max(256, tk // 2))

    m_pad = _round_up(M, tm)

    # --- pad only the activation per call (weight already padded at load time) -
    if (m_pad, k_pad) != (M, K):
        x2 = jnp.pad(x2, ((0, m_pad - M), (0, k_pad - K)))

    grid = (m_pad // tm, n_pad // tn, k_pad // tk)

    est = _vmem_estimate(tm, tn, tk)
    vmem_limit = int(min(max(2 * est, 32 * 1024 * 1024), int(0.75 * vmem_cap)))

    cost = pl.CostEstimate(
        flops=2 * m_pad * n_pad * k_pad,
        transcendentals=0,
        bytes_accessed=(m_pad * k_pad + k_pad * n_pad + m_pad * n_pad + 4 * n_pad) * 2,
    )

    out2 = pl.pallas_call(
        _down_proj_act_kernel,
        out_shape=jax.ShapeDtypeStruct((m_pad, n_pad), x.dtype),
        grid_spec=pltpu.PrefetchScalarGridSpec(
            num_scalar_prefetch=0,
            grid=grid,
            in_specs=[
                pl.BlockSpec((tm, tk), lambda i, j, k: (i, k)),   # x tile
                pl.BlockSpec((tk, tn), lambda i, j, k: (k, j)),   # weight tile
                pl.BlockSpec((1, tn), lambda i, j, k: (0, j)),    # scale (per out col)
                pl.BlockSpec((1, tn), lambda i, j, k: (0, j)),    # bias
            ],
            out_specs=pl.BlockSpec((tm, tn), lambda i, j, k: (i, j)),
            scratch_shapes=[pltpu.VMEM((tm, tn), jnp.float32)],
        ),
        compiler_params=pltpu.CompilerParams(
            dimension_semantics=("parallel", "parallel", "arbitrary"),
            vmem_limit_bytes=vmem_limit,
        ),
        cost_estimate=cost,
    )(x2, w_t, scale, bias)

    if (m_pad, n_pad) != (M, N):
        out2 = out2[:M, :N]
    return out2.reshape(B, S, N)


# ----------------------------------------------------------------------------- #
# Reference & tests
# ----------------------------------------------------------------------------- #
def _reference(x, w, scale, bias):
    """Pure-JAX reference matching torch: bf16 Linear, bf16 scale, bf16 bias."""
    B, S, K = x.shape
    N = w.shape[0]
    h = jnp.dot(x.astype(jnp.float32).reshape(-1, K),
                w.T.astype(jnp.float32)).astype(jnp.bfloat16)
    h = h * scale + bias
    return h.reshape(B, S, N)


def _run_case(key, batch, seq, hidden_size, intermediate_size, random_delta=False):
    kx, kw, ks, kb = jax.random.split(key, 4)
    x = jax.random.normal(
        kx, (batch, seq, intermediate_size), dtype=jnp.float32).astype(jnp.bfloat16)
    # torch down_proj weight layout is (hidden, intermediate).
    w = (jax.random.normal(kw, (hidden_size, intermediate_size), dtype=jnp.float32)
         * 0.02).astype(jnp.bfloat16)

    if random_delta:
        scale = (1.0 + 0.1 * jax.random.normal(
            ks, (1, hidden_size), dtype=jnp.float32)).astype(jnp.bfloat16)
        bias = (0.1 * jax.random.normal(
            kb, (1, hidden_size), dtype=jnp.float32)).astype(jnp.bfloat16)
    else:
        # ActivationLayer init: scaling=ones, bias=zeros, cast to bf16.
        scale = jnp.ones((1, hidden_size), dtype=jnp.bfloat16)
        bias = jnp.zeros((1, hidden_size), dtype=jnp.bfloat16)

    params = prepare_down_proj_params(w, scale, bias)   # load-time, once per layer
    out = down_proj_activation(x, params)
    out = jax.block_until_ready(out)

    ref = _reference(x, w, scale, bias)
    assert out.shape == (batch, seq, hidden_size), out.shape
    assert out.dtype == jnp.bfloat16, out.dtype
    assert jnp.allclose(out.astype(jnp.float32), ref.astype(jnp.float32),
                        atol=1e-1, rtol=1e-1)


if __name__ == "__main__":
    key = jax.random.PRNGKey(0)
    k1, k2, k3 = jax.random.split(key, 3)

    # Decode-like (tiny M), tile-aligned shapes.
    _run_case(k1, batch=2, seq=8, hidden_size=128, intermediate_size=256)

    # Non-divisible shapes exercise the load-time-pad + per-call-slice path.
    _run_case(k2, batch=1, seq=5, hidden_size=96, intermediate_size=200,
              random_delta=True)

    # Prefill-like path (M > 32) with random scale/bias.
    _run_case(k3, batch=1, seq=160, hidden_size=128, intermediate_size=256,
              random_delta=True)

    print("KERNEL_OK")
</pallas_src>

<mosaic_0001>
module attributes {stable_mosaic.version = 11 : i64} {
  func.func @_down_proj_act_kernel(%arg0: i32, %arg1: i32, %arg2: i32, %arg3: memref<16x256xbf16, #tpu.memory_space<vmem>>, %arg4: memref<256x128xbf16, #tpu.memory_space<vmem>>, %arg5: memref<1x128xbf16, #tpu.memory_space<vmem>>, %arg6: memref<1x128xbf16, #tpu.memory_space<vmem>>, %arg7: memref<16x128xbf16, #tpu.memory_space<vmem>>, %arg8: memref<16x128xf32, #tpu.memory_space<vmem>>) attributes {dimension_semantics = [#tpu.dimension_semantics<parallel>, #tpu.dimension_semantics<parallel>, #tpu.dimension_semantics<arbitrary>], iteration_bounds = array<i64: 1, 1, 1>, scalar_prefetch = 0 : i64, scratch_operands = 1 : i64, tpu.core_type = #tpu.core_type<tc>, window_params = [{transform_indices = @transform_0, window_bounds = array<i64: 16, 256>}, {transform_indices = @transform_1, window_bounds = array<i64: 256, 128>}, {transform_indices = @transform_2, window_bounds = array<i64: 1, 128>}, {transform_indices = @transform_3, window_bounds = array<i64: 1, 128>}, {transform_indices = @transform_4, window_bounds = array<i64: 16, 128>}]} {
    %c0_i32 = arith.constant 0 : i32
    %0 = arith.cmpi eq, %arg2, %c0_i32 : i32
    %1 = arith.extui %0 : i1 to i32
    %c0_i32_0 = arith.constant 0 : i32
    %2 = arith.cmpi ne, %1, %c0_i32_0 : i32
    scf.if %2 {
      %cst_10 = arith.constant 0.000000e+00 : f32
      %12 = vector.broadcast %cst_10 : f32 to vector<16x128xf32>
      %c0_11 = arith.constant 0 : index
      %c0_12 = arith.constant 0 : index
      %13 = vector.load %arg8[%c0_11, %c0_12] : memref<16x128xf32, #tpu.memory_space<vmem>>, vector<16x128xf32>
      tpu.vector_store %arg8[%c0_11, %c0_12], %12 {strides = array<i32>} : memref<16x128xf32, #tpu.memory_space<vmem>>, vector<16x128xf32>,
    } else {
    }
    %c0 = arith.constant 0 : index
    %c0_1 = arith.constant 0 : index
    %3 = vector.load %arg8[%c0, %c0_1] : memref<16x128xf32, #tpu.memory_space<vmem>>, vector<16x128xf32>
    %c0_2 = arith.constant 0 : index
    %c0_3 = arith.constant 0 : index
    %4 = vector.load %arg3[%c0_2, %c0_3] : memref<16x256xbf16, #tpu.memory_space<vmem>>, vector<16x256xbf16>
    %c0_4 = arith.constant 0 : index
    %c0_5 = arith.constant 0 : index
    %5 = vector.load %arg4[%c0_4, %c0_5] : memref<256x128xbf16, #tpu.memory_space<vmem>>, vector<256x128xbf16>
    %cst = arith.constant dense<0.000000e+00> : vector<16x128xf32>
    %6 = tpu.matmul %4, %5, %cst {dimension_numbers = #tpu.dot_dimension_numbers<[1], [0], [0], [1], [0, 0, 1, 1], [], []>} : vector<16x256xbf16>, vector<256x128xbf16>, vector<16x128xf32> -> vector<16x128xf32>
    %7 = arith.addf %3, %6 : vector<16x128xf32>
    %c0_6 = arith.constant 0 : index
    %c0_7 = arith.constant 0 : index
    %8 = vector.load %arg8[%c0_6, %c0_7] : memref<16x128xf32, #tpu.memory_space<vmem>>, vector<16x128xf32>
    tpu.vector_store %arg8[%c0_6, %c0_7], %7 {strides = array<i32>} : memref<16x128xf32, #tpu.memory_space<vmem>>, vector<16x128xf32>,
    %c0_i32_8 = arith.constant 0 : i32
    %9 = arith.cmpi eq, %arg2, %c0_i32_8 : i32
    %10 = arith.extui %9 : i1 to i32
    %c0_i32_9 = arith.constant 0 : i32
    %11 = arith.cmpi ne, %10, %c0_i32_9 : i32
    scf.if %11 {
      %c0_10 = arith.constant 0 : index
      %c0_11 = arith.constant 0 : index
      %12 = vector.load %arg8[%c0_10, %c0_11] : memref<16x128xf32, #tpu.memory_space<vmem>>, vector<16x128xf32>
      %13 = arith.truncf %12 : vector<16x128xf32> to vector<16x128xbf16>
      %c0_12 = arith.constant 0 : index
      %c0_13 = arith.constant 0 : index
      %14 = vector.load %arg5[%c0_12, %c0_13] : memref<1x128xbf16, #tpu.memory_space<vmem>>, vector<1x128xbf16>
      %15 = vector.broadcast %14 : vector<1x128xbf16> to vector<16x128xbf16>
      %16 = arith.mulf %13, %15 : vector<16x128xbf16>
      %c0_14 = arith.constant 0 : index
      %c0_15 = arith.constant 0 : index
      %17 = vector.load %arg6[%c0_14, %c0_15] : memref<1x128xbf16, #tpu.memory_space<vmem>>, vector<1x128xbf16>
      %18 = vector.broadcast %17 : vector<1x128xbf16> to vector<16x128xbf16>
      %19 = arith.addf %16, %18 : vector<16x128xbf16>
      %c0_16 = arith.constant 0 : index
      %c0_17 = arith.constant 0 : index
      %20 = vector.load %arg7[%c0_16, %c0_17] : memref<16x128xbf16, #tpu.memory_space<vmem>>, vector<16x128xbf16>
      tpu.vector_store %arg7[%c0_16, %c0_17], %19 {strides = array<i32>} : memref<16x128xbf16, #tpu.memory_space<vmem>>, vector<16x128xbf16>,
    } else {
    }
    return
  }
  func.func @transform_0(%arg0: i32, %arg1: i32, %arg2: i32) -> (i32, i32) {
    %c0_i32 = arith.constant 0 : i32
    return %arg0, %arg2 : i32, i32
  }
  func.func @transform_1(%arg0: i32, %arg1: i32, %arg2: i32) -> (i32, i32) {
    %c0_i32 = arith.constant 0 : i32
    return %arg2, %arg1 : i32, i32
  }
  func.func @transform_2(%arg0: i32, %arg1: i32, %arg2: i32) -> (i32, i32) {
    %c0_i32 = arith.constant 0 : i32
    %c0_i32_0 = arith.constant 0 : i32
    return %c0_i32, %arg1 : i32, i32
  }
  func.func @transform_3(%arg0: i32, %arg1: i32, %arg2: i32) -> (i32, i32) {
    %c0_i32 = arith.constant 0 : i32
    %c0_i32_0 = arith.constant 0 : i32
    return %c0_i32, %arg1 : i32, i32
  }
  func.func @transform_4(%arg0: i32, %arg1: i32, %arg2: i32) -> (i32, i32) {
    %c0_i32 = arith.constant 0 : i32
    return %arg0, %arg1 : i32, i32
  }
}

</mosaic_0001>

<bundles_post_ra>
// kernel: tpu_custom_call.1
= control target key start
LH: loop header
LB: loop body
LE: loop exit
PB: predicated region body
PF: predicated region fallthrough
CT: control target
= control target key end

     0   :  { %9 = vsyncpa [#allocation4], 0  ;;  %s511_s0 = inlined_call_operand.hbm [shape: bf16[16,256], index: 0, kind: input, shape index: {}]   ;;  %s512_s1 = inlined_call_operand.hbm [shape: bf16[256,128], index: 1, kind: input, shape index: {}]   ;;  %s513_s2 = inlined_call_operand.vmem [shape: bf16[1,128], index: 2, kind: input, shape index: {}]   ;;  %s514_s3 = inlined_call_operand.vmem [shape: bf16[1,128], index: 3, kind: input, shape index: {}]   ;;  %s515_s4 = inlined_call_operand.hbm [shape: bf16[16,128], index: 4, kind: output, shape index: {}]  }
   0x1   :  { %10 = vsyncpa [#allocation7], 0 }
   0x2   :  { %11 = vsyncpa [#allocation5], 0  ;;  %s431_s15 = smov [#allocation3]   ;;  %s359_s19 = scalar_lea.hbm %s511_s0, 256 }
   0x3   :  { %s17_s16 = sshll.u32 %s431_s15, 4  ;;  %p360_p0 = scmp.ne.s32.totalorder %s511_s0, %s359_s19  ;;  %s18_s16 = int_to_ptr.vmem [resolvable:$true] %s17_s16 }
   0x4   :  { %p363_p1 = scmp.lt.u32.totalorder %s359_s19, %s511_s0 }
   0x6   :  { %p365_p2 = pnand %p363_p1, %p360_p0 }
   0x8   :  { %368 = shalt.err (!%p365_p2)
}
   0x9   :  { %s369_s24 = scalar_lea.vmem %s18_s16, 256  ;;  %p374_p4 = scmp.lt.s32.totalorder %s18_s16, %s18_s16 }
   0xa   :  { %p370_p3 = scmp.ne.s32.totalorder %s18_s16, %s369_s24  ;;  %p375_p5 = scmp.lt.s32.totalorder %s369_s24, %s369_s24 }
   0xc   :  { %p376_p6 = por %p375_p5, %p374_p4 }
   0xe   :  { %p377_p7 = pnand %p376_p6, %p370_p3 }
  0x10   :  { %380 = shalt.err (!%p377_p7)
}
  0x11   :  { %s432_s25 = smov 128   ;;  %s433_s26 = smov 8  }
  0x12   :  { %23 = dma.hbm_to_vmem [thread:$0]  %s511_s0, 256, %s18_s16, [#allocation4], %s432_s25, %s432_s25, %s433_s26  }
  0x13   :  { %s434_s29 = smov [#allocation6]   ;;  %s381_s7 = scalar_lea.hbm %s512_s1, 2048 }
  0x14   :  { %s29_s30 = sshll.u32 %s434_s29, 4  ;;  %p382_p8 = scmp.ne.s32.totalorder %s512_s1, %s381_s7  ;;  %s30_s30 = int_to_ptr.vmem [resolvable:$true] %s29_s30 }
  0x15   :  { %p385_p9 = scmp.lt.u32.totalorder %s381_s7, %s512_s1 }
  0x17   :  { %p387_p10 = pnand %p385_p9, %p382_p8 }
  0x19   :  { %390 = shalt.err (!%p387_p10)
}
  0x1a   :  { %s391_s12 = scalar_lea.vmem %s30_s30, 2048  ;;  %p396_p12 = scmp.lt.s32.totalorder %s30_s30, %s30_s30 }
  0x1b   :  { %p392_p11 = scmp.ne.s32.totalorder %s30_s30, %s391_s12  ;;  %p397_p13 = scmp.lt.s32.totalorder %s391_s12, %s391_s12 }
  0x1d   :  { %p398_p0 = por %p397_p13, %p396_p12 }
  0x1f   :  { %p399_p1 = pnand %p398_p0, %p392_p11 }
  0x21   :  { %402 = shalt.err (!%p399_p1)
}
  0x22   :  { %s435_s0 = smov 64   ;;  %s436_s13 = smov 4  }
  0x23   :  { %35 = dma.hbm_to_vmem [thread:$0]  %s512_s1, 2048, %s30_s30, [#allocation7], %s435_s0, %s435_s0, %s436_s13  }
  0x24   :  { %425 = dma.done.wait [#allocation4], 256  }
  0x25   :  { %426 = vsyncadd [#allocation4], 4294967040 }
  0x26   :  { %427 = dma.done.wait [#allocation7], 2048  }
  0x27   :  { %428 = vsyncadd [#allocation7], 4294965248  ;;  %v340_v0 = vld [vmem:[#allocation6 + $0x40] sm:$0xff]   ;;  %v342_v2 = vld [vmem:[#allocation6 + $0x48] sm:$0xff]   ;;  %v250_v18 = vlaneseq  ;;  %s437_s19 = smov [#allocation8]  }
  0x28   :  { %v341_v1 = vld [vmem:[#allocation6] sm:$0xff]   ;;  %311 = vmatprep.subr.bf16.mxu0 %v340_v0  ;;  %v343_v3 = vld [vmem:[#allocation6 + $0x8] sm:$0xff]   ;;  %v344_v4 = vld [vmem:[#allocation6 + $0x50] sm:$0xff]   ;;  %s278_s20 = sshll.u32 %s437_s19, 4  ;;  %s279_s20 = int_to_ptr.vmem [resolvable:$true] %s278_s20 }
  0x29   :  { %312 = vmatpush3.bf16.msra.mxu0 %v341_v1  ;;  %v345_v5 = vld [vmem:[#allocation6 + $0x10] sm:$0xff]   ;;  %v346_v6 = vld [vmem:[#allocation6 + $0x58] sm:$0xff]   ;;  %v348_v8 = vld [vmem:[#allocation6 + $0x60] sm:$0xff]   ;;  %v251_v19 = vshrl.u32 %v250_v18, 7  ;;  %p408_p3 = scmp.lt.s32.totalorder %s279_s20, %s279_s20 }
  0x2a   :  { %313 = vmatprep.subr.bf16.mxu0 %v342_v2  ;;  %v347_v7 = vld [vmem:[#allocation6 + $0x18] sm:$0xff]   ;;  %v349_v9 = vld [vmem:[#allocation6 + $0x20] sm:$0xff]   ;;  %v350_v10 = vld [vmem:[#allocation6 + $0x68] sm:$0xff]  }
  0x2b   :  { %v358_v11 = vld [vmem:[#allocation3 + $0x4] ss:$8 sps:$4 sm:$0xff]   ;;  %v351_v12 = vld [vmem:[#allocation6 + $0x28] sm:$0xff]   ;;  %v356_v17 = vld [vmem:[#allocation3] ss:$8 sps:$4 sm:$0xff]   ;;  %v252_v24 = vsub.s32 0, %v251_v19 }
  0x2c   :  { %227 = vmatprep.mubr.bf16.mxu0 %v358_v11  ;;  %v352_v13 = vld [vmem:[#allocation6 + $0x70] sm:$0xff]   ;;  %v354_v15 = vld [vmem:[#allocation6 + $0x78] sm:$0xff]  }
  0x2d   :  { %314 = vmatpush3.bf16.msra.mxu0 %v343_v3  ;;  %v353_v14 = vld [vmem:[#allocation6 + $0x30] sm:$0xff]   ;;  %v355_v16 = vld [vmem:[#allocation6 + $0x38] sm:$0xff]  }
  0x2e   :  { %315 = vmatprep.subr.bf16.mxu0 %v344_v4  ;;  %v246_v20 = vld [vmem:[%s513_s2] sm:$0x1]  ;;  %s403_s2 = scalar_lea.vmem %s279_s20, 128 }
  0x2f   :  { %v255_v21 = vld [vmem:[%s514_s3] sm:$0x1]  ;;  %v248_v23 = vpack.i.b16 %v246_v20, %v246_v20  ;;  %p404_p2 = scmp.ne.s32.totalorder %s279_s20, %s403_s2  ;;  %p409_p4 = scmp.lt.s32.totalorder %s403_s2, %s403_s2 }
  0x30   :  { %v257_v28 = vpack.i.b16 %v255_v21, %v255_v21 }
  0x31   :  { %316 = vmatpush3.bf16.msra.mxu0 %v345_v5  ;;  %v253_v31 = vrot.slane %v248_v23, %v252_v24  ;;  %p410_p5 = por %p409_p4, %p408_p3 }
  0x32   :  { %317 = vmatprep.subr.bf16.mxu0 %v346_v6  ;;  %v262_v33 = vrot.slane %v257_v28, %v252_v24 }
  0x33   :  { %p411_p6 = pnand %p410_p5, %p404_p2 }
  0x35   :  { %318 = vmatpush3.bf16.msra.mxu0 %v347_v7 }
  0x36   :  { %319 = vmatprep.subr.bf16.mxu0 %v348_v8 }
  0x39   :  { %320 = vmatpush3.bf16.msra.mxu0 %v349_v9 }
  0x3a   :  { %321 = vmatprep.subr.bf16.mxu0 %v350_v10 }
  0x3d   :  { %322 = vmatpush3.bf16.msra.mxu0 %v351_v12 }
  0x3e   :  { %323 = vmatprep.subr.bf16.mxu0 %v352_v13 }
  0x41   :  { %324 = vmatpush3.bf16.msra.mxu0 %v353_v14 }
  0x42   :  { %325 = vmatprep.subr.bf16.mxu0 %v354_v15 }
  0x45   :  { %326 = vmatpush3.bf16.msra.mxu0 %v355_v16 }
  0x48   :  { %228 = vmatmul.mubr.bf16.vlgmr.msra.gmra.mrb[0].mxu0 %v356_v17 }
 0x11b   :  { %v327_v22 = vpop.f32.mrb[0].mxu0 }
 0x11c   :  { %v328_v25 = vpop.f32.mrb[1].mxu0 }
 0x11d   :  { %v329_v26 = vadd.f32 %v328_v25, %v327_v22  ;;  %v330_v27 = vpop.f32.mrb[2].mxu0 }
 0x11e   :  { %v331_v29 = vpop.f32.mrb[3].mxu0 }
 0x11f   :  { %v332_v30 = vadd.f32 %v331_v29, %v330_v27 }
 0x121   :  { %v245_v32 = vpack.c.bf16 %v332_v30, %v329_v26 }
 0x123   :  { %v254_v34 = vmul.bf16 %v253_v31, %v245_v32 }
 0x125   :  { %v263_v35 = vadd.bf16 %v262_v33, %v254_v34 }
 0x127   :  { %v309_v36 = vcombine.low %v263_v35, %v263_v35  ;;  %v310_v37 = vcombine.high %v263_v35, %v263_v35 }
 0x129   :  { %271 = vst [vmem:[#allocation8] sm:$0xf] %v309_v36  ;;  %272 = vst [vmem:[#allocation8 + $0x4] sm:$0xf] %v310_v37 }
 0x12a   :  { %414 = shalt.err (!%p411_p6)
}
 0x12b   :  { %s415_s22 = scalar_lea.hbm %s515_s4, 128 }
 0x12c   :  { %p416_p7 = scmp.ne.s32.totalorder %s515_s4, %s415_s22  ;;  %p419_p8 = scmp.lt.u32.totalorder %s415_s22, %s515_s4 }
 0x12e   :  { %p421_p9 = pnand %p419_p8, %p416_p7 }
 0x130   :  { %424 = shalt.err (!%p421_p9)
}
 0x131   :  { %284 = dma.vmem_to_hbm [thread:$0]  %s279_s20, 128, %s515_s4, [#allocation5], %s435_s0, %s435_s0, %s436_s13  }
 0x132   :  { %429 = dma.done.wait [#allocation5], 128  }
 0x133   :  { %430 = vsyncadd [#allocation5], 4294967168 }
 0x134   :  { %288 = vsyncpa [#allocation4], 1 }
 0x135   :  { %289 = vsyncpa [#allocation7], 1 }
 0x136   :  { %290 = vsyncpa [#allocation5], 1 }

</bundles_post_ra>
